<compile_context>
chip_gen: v7x
topology: tpu7x:2x2x1
jax: 0.10.0
libtpu: 0.0.40
codegen_flags: <defaults>
</compile_context>

<pallas_src>
import numpy as np
import jax
import jax.numpy as jnp
from jax.experimental import pallas as pl
from jax.experimental.pallas import tpu as pltpu

NEG_SLOPE = 0.01   # PyTorch nn.LeakyReLU default negative_slope
BN_EPS = 1e-5


# ----------------------------- fused Pallas kernel -----------------------------

def _make_double_conv_kernel(nb, H, W, Cin, Cout):
    WCin, WCout = W * Cin, W * Cout
    BH = H + 2              # per-image block height inside the pad scratch
    M = nb * BH - 2         # matmul M (rows) per grid step

    def kernel(x_ref, w1_ref, b1_ref, w2_ref, b2_ref, o_ref, pad1, pad2):
        # x_ref : (nb, H, W*Cin)              lane-dense input activations
        # w1_ref: (3*W*Cin,  W*Cout) bf16     banded conv1 weight (BN + W-halo folded)
        # b1_ref: (1, W*Cout) f32             conv1 bias tiled over W (BN folded)
        # w2_ref: (3*W*Cout, W*Cout) bf16
        # b2_ref: (1, W*Cout) f32
        # o_ref : (nb, H, W*Cout)             lane-dense output (multiple of 128 lanes)
        # pad1  : VMEM (nb*(H+2), W*Cin)  f32 row-halo padded stage-1 activations
        # pad2  : VMEM (nb*(H+2), W*Cout) f32 row-halo padded stage-2 activations

        zrow1 = jnp.zeros((1, WCin), jnp.float32)
        zrow2 = jnp.zeros((1, WCout), jnp.float32)

        # Zero ONLY the halo rows; interior rows are fully overwritten below.
        # Done every grid step (scratch is uninitialized & per-core).
        for b in range(nb):
            base = b * BH
            pad1[base:base + 1, :] = zrow1
            pad1[base + H + 1:base + H + 2, :] = zrow1
            pad2[base:base + 1, :] = zrow2
            pad2[base + H + 1:base + H + 2, :] = zrow2
            pad1[base + 1:base + H + 1, :] = x_ref[b].astype(jnp.float32)

        def conv_stage(pad, w_ref, b_ref):
            # acc[r] = sum_kh pad[r+kh] @ band[kh], merged into one MXU dot:
            # LHS = lane-concat of the three row-shifted views (K = 3*W*C).
            lhs = jnp.concatenate(
                [pad[0:M, :], pad[1:M + 1, :], pad[2:M + 2, :]], axis=1)
            acc = jnp.dot(lhs.astype(jnp.bfloat16), w_ref[...],
                          preferred_element_type=jnp.float32)
            a = acc + b_ref[...]
            return jnp.where(a >= 0.0, a, NEG_SLOPE * a)

        # ---- stage 1: Conv3x3 (+ folded BN) + LeakyReLU ----
        a1 = conv_stage(pad1, w1_ref, b1_ref)            # (M, W*Cout) f32
        for b in range(nb):
            base = b * BH
            pad2[base + 1:base + H + 1, :] = a1[base:base + H, :]

        # ---- stage 2: Conv3x3 (+ folded BN) + LeakyReLU ----
        a2 = conv_stage(pad2, w2_ref, b2_ref)            # (M, W*Cout) f32
        for b in range(nb):
            base = b * BH
            o_ref[b] = a2[base:base + H, :].astype(o_ref.dtype)

    return kernel


# ----------------------------- weight preprocessing -----------------------------

def _band_weight(w, W):
    """HWIO (3,3,Cin,Cout) conv weight -> (3*W*Cin, W*Cout) banded matmul weight
    with the width halo folded in (out-of-range kw taps dropped == zero padding):
        band[kh*W*Cin + j*Cin + ci, w*Cout + co] = wt[kh, kw, ci, co],  j = w+kw-1, 0<=j<W
    A padding-1 3x3 conv in the lane-dense (rows=H, lanes=W*C) layout with zero
    halo rows above/below each image then becomes
        out = concat_lanes(xpad[0:M], xpad[1:M+1], xpad[2:M+2]) @ band
    """
    _, _, Cin, Cout = w.shape
    sel = np.zeros((3, W, W), np.float32)
    for kw in range(3):
        for ww in range(W):
            j = ww + kw - 1
            if 0 <= j < W:
                sel[kw, j, ww] = 1.0
    band = jnp.einsum('kjw,hkio->hjiwo', jnp.asarray(sel), w)   # (3, W, Cin, W, Cout)
    return band.reshape(3 * W * Cin, W * Cout)


def prepare_params(p, W):
    """One-time: fold eval-mode BatchNorm into the conv weights, band them,
    and pre-cast the matmul weights to bf16 (biases stay f32)."""
    def fold(w, b, bn):
        gamma, beta, mean, var = bn
        scale = gamma / jnp.sqrt(var + BN_EPS)            # per output channel
        return w * scale, b * scale + (beta - mean * scale)

    w1, b1 = fold(p['w1'], p['b1'], p['bn1'])
    w2, b2 = fold(p['w2'], p['b2'], p['bn2'])
    Cin, Cout = p['w1'].shape[2], p['w1'].shape[3]
    return {
        'w1b': _band_weight(w1, W).astype(jnp.bfloat16),
        'b1t': jnp.tile(b1, W)[None, :],
        'w2b': _band_weight(w2, W).astype(jnp.bfloat16),
        'b2t': jnp.tile(b2, W)[None, :],
        'Cin': Cin, 'Cout': Cout,
    }


# ----------------------------- tiling heuristics -----------------------------

def _pick_batch_tile(N, H, target_m=128):
    """Largest divisor of N with nb*(H+2) <= target_m (MXU M occupancy),
    stepping down if needed to keep >=2 grid steps (v7x megacore + pipelining)."""
    cap = max(1, target_m // (H + 2))
    nb = 1
    for c in range(1, min(N, cap) + 1):
        if N % c == 0:
            nb = c
    if N // nb < 2:
        for c in range(nb, 0, -1):
            if N % c == 0 and N // c >= 2:
                nb = c
                break
    return nb


# ----------------------------- forward wrappers -----------------------------

def double_conv3x3_lane_dense(x, fp, H, W, block_n=None):
    """x: (N, H, W*Cin) lane-dense activations -> (N, H, W*Cout).
    Chained layers should call this directly to avoid NCHW round trips."""
    N = x.shape[0]
    Cin, Cout = fp['Cin'], fp['Cout']
    WCin, WCout = W * Cin, W * Cout
    assert x.shape == (N, H, WCin)
    # NOTE: keep W*Cout a multiple of 128 (here 128) for unmasked vector stores.

    nb = block_n if block_n is not None else _pick_batch_tile(N, H)
    assert N % nb == 0
    steps = N // nb
    M = nb * (H + 2) - 2

    flops = steps * 2 * M * (3 * WCin + 3 * WCout) * WCout
    bytes_accessed = (4 * x.size + 4 * N * H * WCout
                      + 2 * (fp['w1b'].size + fp['w2b'].size)
                      + 4 * (fp['b1t'].size + fp['b2t'].size))

    # Explicit VMEM budget (double-buffered in/out blocks, resident bf16
    # weights, f32 pad scratches, in-kernel temporaries) with headroom, so the
    # batch tile never trips a chip-dependent default scoped limit.
    est = (2 * nb * H * WCin * 4 + 2 * nb * H * WCout * 4
           + 2 * 2 * (fp['w1b'].size + fp['w2b'].size)
           + nb * (H + 2) * (WCin + WCout) * 4
           + M * 3 * (WCin + WCout) * 2 + 4 * M * WCout * 4)
    vmem_limit = int(min(max(4 * est, 8 << 20), 56 << 20))

    return pl.pallas_call(
        _make_double_conv_kernel(nb, H, W, Cin, Cout),
        out_shape=jax.ShapeDtypeStruct((N, H, WCout), x.dtype),
        grid=(steps,),
        in_specs=[
            pl.BlockSpec((nb, H, WCin), lambda n: (n, 0, 0)),
            pl.BlockSpec((3 * WCin, WCout), lambda n: (0, 0)),
            pl.BlockSpec((1, WCout), lambda n: (0, 0)),
            pl.BlockSpec((3 * WCout, WCout), lambda n: (0, 0)),
            pl.BlockSpec((1, WCout), lambda n: (0, 0)),
        ],
        out_specs=pl.BlockSpec((nb, H, WCout), lambda n: (n, 0, 0)),
        scratch_shapes=[
            pltpu.VMEM((nb * (H + 2), WCin), jnp.float32),
            pltpu.VMEM((nb * (H + 2), WCout), jnp.float32),
        ],
        compiler_params=pltpu.CompilerParams(
            dimension_semantics=("parallel",),
            vmem_limit_bytes=vmem_limit),
        cost_estimate=pl.CostEstimate(flops=flops, transcendentals=0,
                                      bytes_accessed=bytes_accessed),
    )(x, fp['w1b'], fp['b1t'], fp['w2b'], fp['b2t'])


def double_conv3x3_forward(x_nchw, fp, block_n=None):
    """PyTorch-style NCHW interface around the lane-dense kernel."""
    N, Cin, H, W = x_nchw.shape
    assert Cin == fp['Cin']
    x = jnp.transpose(x_nchw, (0, 2, 3, 1)).reshape(N, H, W * Cin)
    out = double_conv3x3_lane_dense(x, fp, H, W, block_n=block_n)
    return jnp.transpose(out.reshape(N, H, W, fp['Cout']), (0, 3, 1, 2))


# ----------------------------- parameter init -----------------------------

def init_params(key, in_ch, out_ch):
    ks = jax.random.split(key, 12)

    def conv_w(k, ci, co):
        return 0.1 * jax.random.normal(k, (3, 3, ci, co), jnp.float32)   # HWIO

    def conv_b(k, co):
        return 0.05 * jax.random.normal(k, (co,), jnp.float32)

    def bn(kg, kb, km, kv, c):
        gamma = 1.0 + 0.1 * jax.random.normal(kg, (c,), jnp.float32)
        beta = 0.1 * jax.random.normal(kb, (c,), jnp.float32)
        mean = 0.1 * jax.random.normal(km, (c,), jnp.float32)
        var = 1.0 + 0.2 * jax.random.uniform(kv, (c,), jnp.float32)
        return (gamma, beta, mean, var)

    return {
        'w1': conv_w(ks[0], in_ch, out_ch), 'b1': conv_b(ks[1], out_ch),
        'bn1': bn(ks[2], ks[3], ks[4], ks[5], out_ch),
        'w2': conv_w(ks[6], out_ch, out_ch), 'b2': conv_b(ks[7], out_ch),
        'bn2': bn(ks[8], ks[9], ks[10], ks[11], out_ch),
    }


# ----------------------------- pure-JAX reference -----------------------------

def ref_forward(x_nchw, p):
    x = jnp.transpose(x_nchw, (0, 2, 3, 1))

    def block(a, w, b, bn):
        gamma, beta, mean, var = bn
        y = jax.lax.conv_general_dilated(
            a, w, (1, 1), 'SAME',
            dimension_numbers=('NHWC', 'HWIO', 'NHWC'),
            precision=jax.lax.Precision.HIGHEST) + b
        y = (y - mean) / jnp.sqrt(var + BN_EPS) * gamma + beta
        return jnp.where(y >= 0.0, y, NEG_SLOPE * y)

    h = block(x, p['w1'], p['b1'], p['bn1'])
    h = block(h, p['w2'], p['b2'], p['bn2'])
    return jnp.transpose(h, (0, 3, 1, 2))


# ----------------------------- main -----------------------------

if __name__ == "__main__":
    in_ch, out_ch = 4, 8
    N, H, W = 4, 16, 16

    key = jax.random.PRNGKey(0)
    kp, kx = jax.random.split(key)
    params = init_params(kp, in_ch, out_ch)
    x = jax.random.normal(kx, (N, in_ch, H, W), jnp.float32)   # NCHW, like PyTorch

    fused_params = prepare_params(params, W)        # one-time BN fold + banding + bf16 cast
    out = jax.block_until_ready(double_conv3x3_forward(x, fused_params))
    assert out.shape == (N, out_ch, H, W), out.shape

    ref = jax.block_until_ready(ref_forward(x, params))
    np.testing.assert_allclose(np.asarray(out), np.asarray(ref), rtol=2e-2, atol=2e-2)

    print("KERNEL_OK")
</pallas_src>

<mosaic_0001>
module attributes {stable_mosaic.version = 11 : i64} {
  func.func @kernel(%arg0: i32, %arg1: memref<2x16x64xf32, #tpu.memory_space<vmem>>, %arg2: memref<192x128xbf16, #tpu.memory_space<vmem>>, %arg3: memref<1x128xf32, #tpu.memory_space<vmem>>, %arg4: memref<384x128xbf16, #tpu.memory_space<vmem>>, %arg5: memref<1x128xf32, #tpu.memory_space<vmem>>, %arg6: memref<2x16x128xf32, #tpu.memory_space<vmem>>, %arg7: memref<36x64xf32, #tpu.memory_space<vmem>>, %arg8: memref<36x128xf32, #tpu.memory_space<vmem>>) attributes {dimension_semantics = [#tpu.dimension_semantics<parallel>], iteration_bounds = array<i64: 2>, scalar_prefetch = 0 : i64, scratch_operands = 2 : i64, tpu.core_type = #tpu.core_type<tc>, window_params = [{transform_indices = @transform_0, window_bounds = array<i64: 2, 16, 64>}, {pipeline_mode = #tpu.pipeline_mode<synchronous>, transform_indices = @transform_1, window_bounds = array<i64: 192, 128>}, {pipeline_mode = #tpu.pipeline_mode<synchronous>, transform_indices = @transform_2, window_bounds = array<i64: 1, 128>}, {pipeline_mode = #tpu.pipeline_mode<synchronous>, transform_indices = @transform_3, window_bounds = array<i64: 384, 128>}, {pipeline_mode = #tpu.pipeline_mode<synchronous>, transform_indices = @transform_4, window_bounds = array<i64: 1, 128>}, {transform_indices = @transform_5, window_bounds = array<i64: 2, 16, 128>}]} {
    %cst = arith.constant 0.000000e+00 : f32
    %0 = vector.broadcast %cst : f32 to vector<1x64xf32>
    %cst_0 = arith.constant 0.000000e+00 : f32
    %1 = vector.broadcast %cst_0 : f32 to vector<1x128xf32>
    %c0 = arith.constant 0 : index
    %c0_1 = arith.constant 0 : index
    %2 = vector.load %arg7[%c0, %c0_1] : memref<36x64xf32, #tpu.memory_space<vmem>>, vector<1x64xf32>
    tpu.vector_store %arg7[%c0, %c0_1], %0 {strides = array<i32>} : memref<36x64xf32, #tpu.memory_space<vmem>>, vector<1x64xf32>,
    %c17 = arith.constant 17 : index
    %c0_2 = arith.constant 0 : index
    %3 = vector.load %arg7[%c17, %c0_2] : memref<36x64xf32, #tpu.memory_space<vmem>>, vector<1x64xf32>
    tpu.vector_store %arg7[%c17, %c0_2], %0 {strides = array<i32>} : memref<36x64xf32, #tpu.memory_space<vmem>>, vector<1x64xf32>,
    %c0_3 = arith.constant 0 : index
    %c0_4 = arith.constant 0 : index
    %4 = vector.load %arg8[%c0_3, %c0_4] : memref<36x128xf32, #tpu.memory_space<vmem>>, vector<1x128xf32>
    tpu.vector_store %arg8[%c0_3, %c0_4], %1 {strides = array<i32>} : memref<36x128xf32, #tpu.memory_space<vmem>>, vector<1x128xf32>,
    %c17_5 = arith.constant 17 : index
    %c0_6 = arith.constant 0 : index
    %5 = vector.load %arg8[%c17_5, %c0_6] : memref<36x128xf32, #tpu.memory_space<vmem>>, vector<1x128xf32>
    tpu.vector_store %arg8[%c17_5, %c0_6], %1 {strides = array<i32>} : memref<36x128xf32, #tpu.memory_space<vmem>>, vector<1x128xf32>,
    %c0_7 = arith.constant 0 : index
    %c0_8 = arith.constant 0 : index
    %c0_9 = arith.constant 0 : index
    %6 = vector.load %arg1[%c0_7, %c0_8, %c0_9] : memref<2x16x64xf32, #tpu.memory_space<vmem>>, vector<1x16x64xf32>
    %7 = vector.shape_cast %6 : vector<1x16x64xf32> to vector<16x64xf32>
    %c1 = arith.constant 1 : index
    %c0_10 = arith.constant 0 : index
    %8 = vector.load %arg7[%c1, %c0_10] : memref<36x64xf32, #tpu.memory_space<vmem>>, vector<16x64xf32>
    tpu.vector_store %arg7[%c1, %c0_10], %7 {strides = array<i32>} : memref<36x64xf32, #tpu.memory_space<vmem>>, vector<16x64xf32>,
    %c18 = arith.constant 18 : index
    %c0_11 = arith.constant 0 : index
    %9 = vector.load %arg7[%c18, %c0_11] : memref<36x64xf32, #tpu.memory_space<vmem>>, vector<1x64xf32>
    tpu.vector_store %arg7[%c18, %c0_11], %0 {strides = array<i32>} : memref<36x64xf32, #tpu.memory_space<vmem>>, vector<1x64xf32>,
    %c35 = arith.constant 35 : index
    %c0_12 = arith.constant 0 : index
    %10 = vector.load %arg7[%c35, %c0_12] : memref<36x64xf32, #tpu.memory_space<vmem>>, vector<1x64xf32>
    tpu.vector_store %arg7[%c35, %c0_12], %0 {strides = array<i32>} : memref<36x64xf32, #tpu.memory_space<vmem>>, vector<1x64xf32>,
    %c18_13 = arith.constant 18 : index
    %c0_14 = arith.constant 0 : index
    %11 = vector.load %arg8[%c18_13, %c0_14] : memref<36x128xf32, #tpu.memory_space<vmem>>, vector<1x128xf32>
    tpu.vector_store %arg8[%c18_13, %c0_14], %1 {strides = array<i32>} : memref<36x128xf32, #tpu.memory_space<vmem>>, vector<1x128xf32>,
    %c35_15 = arith.constant 35 : index
    %c0_16 = arith.constant 0 : index
    %12 = vector.load %arg8[%c35_15, %c0_16] : memref<36x128xf32, #tpu.memory_space<vmem>>, vector<1x128xf32>
    tpu.vector_store %arg8[%c35_15, %c0_16], %1 {strides = array<i32>} : memref<36x128xf32, #tpu.memory_space<vmem>>, vector<1x128xf32>,
    %c1_17 = arith.constant 1 : index
    %c0_18 = arith.constant 0 : index
    %c0_19 = arith.constant 0 : index
    %13 = vector.load %arg1[%c1_17, %c0_18, %c0_19] : memref<2x16x64xf32, #tpu.memory_space<vmem>>, vector<1x16x64xf32>
    %14 = vector.shape_cast %13 : vector<1x16x64xf32> to vector<16x64xf32>
    %c19 = arith.constant 19 : index
    %c0_20 = arith.constant 0 : index
    %15 = vector.load %arg7[%c19, %c0_20] : memref<36x64xf32, #tpu.memory_space<vmem>>, vector<16x64xf32>
    tpu.vector_store %arg7[%c19, %c0_20], %14 {strides = array<i32>} : memref<36x64xf32, #tpu.memory_space<vmem>>, vector<16x64xf32>,
    %c0_21 = arith.constant 0 : index
    %c0_22 = arith.constant 0 : index
    %16 = vector.load %arg7[%c0_21, %c0_22] : memref<36x64xf32, #tpu.memory_space<vmem>>, vector<34x64xf32>
    %c1_23 = arith.constant 1 : index
    %c0_24 = arith.constant 0 : index
    %17 = vector.load %arg7[%c1_23, %c0_24] : memref<36x64xf32, #tpu.memory_space<vmem>>, vector<34x64xf32>
    %c2 = arith.constant 2 : index
    %c0_25 = arith.constant 0 : index
    %18 = vector.load %arg7[%c2, %c0_25] : memref<36x64xf32, #tpu.memory_space<vmem>>, vector<34x64xf32>
    %19 = tpu.concatenate %16, %17, %18 in 1 : vector<34x64xf32>, vector<34x64xf32>, vector<34x64xf32> -> vector<34x192xf32>
    %20 = arith.truncf %19 : vector<34x192xf32> to vector<34x192xbf16>
    %c0_26 = arith.constant 0 : index
    %c0_27 = arith.constant 0 : index
    %21 = vector.load %arg2[%c0_26, %c0_27] : memref<192x128xbf16, #tpu.memory_space<vmem>>, vector<192x128xbf16>
    %cst_28 = arith.constant dense<0.000000e+00> : vector<34x128xf32>
    %22 = tpu.matmul %20, %21, %cst_28 {dimension_numbers = #tpu.dot_dimension_numbers<[1], [0], [0], [1], [0, 0, 1, 1], [], []>} : vector<34x192xbf16>, vector<192x128xbf16>, vector<34x128xf32> -> vector<34x128xf32>
    %c0_29 = arith.constant 0 : index
    %c0_30 = arith.constant 0 : index
    %23 = vector.load %arg3[%c0_29, %c0_30] : memref<1x128xf32, #tpu.memory_space<vmem>>, vector<1x128xf32>
    %24 = vector.broadcast %23 : vector<1x128xf32> to vector<34x128xf32>
    %25 = arith.addf %22, %24 : vector<34x128xf32>
    %cst_31 = arith.constant 0.000000e+00 : f32
    %26 = vector.broadcast %cst_31 : f32 to vector<34x128xf32>
    %27 = arith.cmpf oge, %25, %26 : vector<34x128xf32>
    %cst_32 = arith.constant 0.00999999977 : f32
    %28 = vector.broadcast %cst_32 : f32 to vector<34x128xf32>
    %29 = arith.mulf %28, %25 : vector<34x128xf32>
    %30 = arith.select %27, %25, %29 : vector<34x128xi1>, vector<34x128xf32>
    %31 = vector.extract_strided_slice %30 {offsets = [0, 0], sizes = [16, 128], strides = [1, 1]} : vector<34x128xf32> to vector<16x128xf32>
    %c1_33 = arith.constant 1 : index
    %c0_34 = arith.constant 0 : index
    %32 = vector.load %arg8[%c1_33, %c0_34] : memref<36x128xf32, #tpu.memory_space<vmem>>, vector<16x128xf32>
    tpu.vector_store %arg8[%c1_33, %c0_34], %31 {strides = array<i32>} : memref<36x128xf32, #tpu.memory_space<vmem>>, vector<16x128xf32>,
    %33 = vector.extract_strided_slice %30 {offsets = [18, 0], sizes = [16, 128], strides = [1, 1]} : vector<34x128xf32> to vector<16x128xf32>
    %c19_35 = arith.constant 19 : index
    %c0_36 = arith.constant 0 : index
    %34 = vector.load %arg8[%c19_35, %c0_36] : memref<36x128xf32, #tpu.memory_space<vmem>>, vector<16x128xf32>
    tpu.vector_store %arg8[%c19_35, %c0_36], %33 {strides = array<i32>} : memref<36x128xf32, #tpu.memory_space<vmem>>, vector<16x128xf32>,
    %c0_37 = arith.constant 0 : index
    %c0_38 = arith.constant 0 : index
    %35 = vector.load %arg8[%c0_37, %c0_38] : memref<36x128xf32, #tpu.memory_space<vmem>>, vector<34x128xf32>
    %c1_39 = arith.constant 1 : index
    %c0_40 = arith.constant 0 : index
    %36 = vector.load %arg8[%c1_39, %c0_40] : memref<36x128xf32, #tpu.memory_space<vmem>>, vector<34x128xf32>
    %c2_41 = arith.constant 2 : index
    %c0_42 = arith.constant 0 : index
    %37 = vector.load %arg8[%c2_41, %c0_42] : memref<36x128xf32, #tpu.memory_space<vmem>>, vector<34x128xf32>
    %38 = tpu.concatenate %35, %36, %37 in 1 : vector<34x128xf32>, vector<34x128xf32>, vector<34x128xf32> -> vector<34x384xf32>
    %39 = arith.truncf %38 : vector<34x384xf32> to vector<34x384xbf16>
    %c0_43 = arith.constant 0 : index
    %c0_44 = arith.constant 0 : index
    %40 = vector.load %arg4[%c0_43, %c0_44] : memref<384x128xbf16, #tpu.memory_space<vmem>>, vector<384x128xbf16>
    %cst_45 = arith.constant dense<0.000000e+00> : vector<34x128xf32>
    %41 = tpu.matmul %39, %40, %cst_45 {dimension_numbers = #tpu.dot_dimension_numbers<[1], [0], [0], [1], [0, 0, 1, 1], [], []>} : vector<34x384xbf16>, vector<384x128xbf16>, vector<34x128xf32> -> vector<34x128xf32>
    %c0_46 = arith.constant 0 : index
    %c0_47 = arith.constant 0 : index
    %42 = vector.load %arg5[%c0_46, %c0_47] : memref<1x128xf32, #tpu.memory_space<vmem>>, vector<1x128xf32>
    %43 = vector.broadcast %42 : vector<1x128xf32> to vector<34x128xf32>
    %44 = arith.addf %41, %43 : vector<34x128xf32>
    %cst_48 = arith.constant 0.000000e+00 : f32
    %45 = vector.broadcast %cst_48 : f32 to vector<34x128xf32>
    %46 = arith.cmpf oge, %44, %45 : vector<34x128xf32>
    %cst_49 = arith.constant 0.00999999977 : f32
    %47 = vector.broadcast %cst_49 : f32 to vector<34x128xf32>
    %48 = arith.mulf %47, %44 : vector<34x128xf32>
    %49 = arith.select %46, %44, %48 : vector<34x128xi1>, vector<34x128xf32>
    %50 = vector.extract_strided_slice %49 {offsets = [0, 0], sizes = [16, 128], strides = [1, 1]} : vector<34x128xf32> to vector<16x128xf32>
    %c0_50 = arith.constant 0 : index
    %c0_51 = arith.constant 0 : index
    %c0_52 = arith.constant 0 : index
    %51 = vector.load %arg6[%c0_50, %c0_51, %c0_52] : memref<2x16x128xf32, #tpu.memory_space<vmem>>, vector<1x16x128xf32>
    %52 = vector.shape_cast %51 : vector<1x16x128xf32> to vector<16x128xf32>
    %53 = vector.shape_cast %50 : vector<16x128xf32> to vector<1x16x128xf32>
    tpu.vector_store %arg6[%c0_50, %c0_51, %c0_52], %53 {strides = array<i32>} : memref<2x16x128xf32, #tpu.memory_space<vmem>>, vector<1x16x128xf32>,
    %54 = vector.extract_strided_slice %49 {offsets = [18, 0], sizes = [16, 128], strides = [1, 1]} : vector<34x128xf32> to vector<16x128xf32>
    %c1_53 = arith.constant 1 : index
    %c0_54 = arith.constant 0 : index
    %c0_55 = arith.constant 0 : index
    %55 = vector.load %arg6[%c1_53, %c0_54, %c0_55] : memref<2x16x128xf32, #tpu.memory_space<vmem>>, vector<1x16x128xf32>
    %56 = vector.shape_cast %55 : vector<1x16x128xf32> to vector<16x128xf32>
    %57 = vector.shape_cast %54 : vector<16x128xf32> to vector<1x16x128xf32>
    tpu.vector_store %arg6[%c1_53, %c0_54, %c0_55], %57 {strides = array<i32>} : memref<2x16x128xf32, #tpu.memory_space<vmem>>, vector<1x16x128xf32>,
    return
  }
  func.func @transform_0(%arg0: i32) -> (i32, i32, i32) {
    %c0_i32 = arith.constant 0 : i32
    %c0_i32_0 = arith.constant 0 : i32
    %c0_i32_1 = arith.constant 0 : i32
    return %arg0, %c0_i32, %c0_i32_0 : i32, i32, i32
  }
  func.func @transform_1(%arg0: i32) -> (i32, i32) {
    %c0_i32 = arith.constant 0 : i32
    %c0_i32_0 = arith.constant 0 : i32
    %c0_i32_1 = arith.constant 0 : i32
    return %c0_i32, %c0_i32_0 : i32, i32
  }
  func.func @transform_2(%arg0: i32) -> (i32, i32) {
    %c0_i32 = arith.constant 0 : i32
    %c0_i32_0 = arith.constant 0 : i32
    %c0_i32_1 = arith.constant 0 : i32
    return %c0_i32, %c0_i32_0 : i32, i32
  }
  func.func @transform_3(%arg0: i32) -> (i32, i32) {
    %c0_i32 = arith.constant 0 : i32
    %c0_i32_0 = arith.constant 0 : i32
    %c0_i32_1 = arith.constant 0 : i32
    return %c0_i32, %c0_i32_0 : i32, i32
  }
  func.func @transform_4(%arg0: i32) -> (i32, i32) {
    %c0_i32 = arith.constant 0 : i32
    %c0_i32_0 = arith.constant 0 : i32
    %c0_i32_1 = arith.constant 0 : i32
    return %c0_i32, %c0_i32_0 : i32, i32
  }
  func.func @transform_5(%arg0: i32) -> (i32, i32, i32) {
    %c0_i32 = arith.constant 0 : i32
    %c0_i32_0 = arith.constant 0 : i32
    %c0_i32_1 = arith.constant 0 : i32
    return %arg0, %c0_i32, %c0_i32_0 : i32, i32, i32
  }
}

</mosaic_0001>

<bundles_post_ra>
// kernel: tpu_custom_call.1
= control target key start
LH: loop header
LB: loop body
LE: loop exit
PB: predicated region body
PF: predicated region fallthrough
CT: control target
= control target key end

     0   :  { %10 = vsyncpa [#allocation5], 0  ;;  %s1758_s0 = inlined_call_operand.hbm [shape: f32[4,16,64], index: 0, kind: input, shape index: {}]   ;;  %s1759_s1 = inlined_call_operand.hbm [shape: bf16[192,128], index: 1, kind: input, shape index: {}]   ;;  %s1760_s2 = inlined_call_operand.vmem [shape: f32[1,128], index: 2, kind: input, shape index: {}]   ;;  %s1761_s3 = inlined_call_operand.hbm [shape: bf16[384,128], index: 3, kind: input, shape index: {}]   ;;  %s1762_s4 = inlined_call_operand.vmem [shape: f32[1,128], index: 4, kind: input, shape index: {}]   ;;  %s1763_s5 = inlined_call_operand.hbm [shape: f32[4,16,128], index: 5, kind: output, shape index: {}]  }
   0x1   :  { %12 = vsyncpa [#allocation5 + $0x1], 0 }
   0x2   :  { %13 = vsyncpa [#allocation8], 0 }
   0x3   :  { %14 = vsyncpa [#allocation6], 0 }
   0x4   :  { %16 = vsyncpa [#allocation6 + $0x1], 0  ;;  %s1460_s18 = smov 0   ;;  %s1462_s19 = smov 0  }
   0x5   :  { %s1464_s20 = smov 0   ;;  %s1466_s21 = smov 0  }
   0x6 LB: > { %s1481_s22 = sadd.s32 4294967295, %s1414_s21   ;;  %s992_s23 = sadd.s32 4294967294, %s1414_s21   ;;  %s1414_s21 = sphi %s1466_s21, %s1783_s21   ;;  %s1410_s20 = sphi %s1464_s20, %s1782_s20   ;;  %s1406_s19 = sphi %s1462_s19, %s1781_s19   ;;  %s1402_s18 = sphi %s1460_s18, %s1780_s18  }
   0x7   : > { %p42_p0 = scmp.ne.s32.totalorder %s1406_s19, %s1402_s18  ;;  %p1764_p1 = scmp.eq.s32.totalorder %s1481_s22, 0 }
   0x8   : > { %p156_p3 = scmp.eq.s32.totalorder %s992_s23, 1  ;;  %p993_p5 = scmp.ge.s32.totalorder %s1414_s21, 1 }
   0x9   : > { %p1490_p4 = por %p1764_p1, %p42_p0  ;;  %p163_p7 = scmp.lt.s32.totalorder %s1414_s21, 3 }
   0xa   : > { %p1495_p6 = por %p156_p3, %p42_p0  ;;  %s1416_s27 = smov [#allocation7]  }
   0xb   : > { %s1767_s24 = scalar_select %p1490_p4, 1, 0 }
   0xc   : > { %s1768_s25 = scalar_select %p1495_p6, 1, 0 }
   0xd   : > { %p1500_p8 = pnand %p993_p5, %p163_p7  ;;  %s175_s28 = sshll.u32 %s1416_s27, 4  ;;  %s1504_s28 = int_to_ptr.vmem [resolvable:$true] %s175_s28 }
   0xe   : > { %s1417_s30 = smov [#allocation9]   ;;  %s1258_s9 = scalar_lea.hbm %s1759_s1, 1536 }
   0xf   : > { %p1147_p9 = pneg %p1500_p8  ;;  %s191_s6 = sshll.u32 %s1417_s30, 4  ;;  %s1515_s6 = int_to_ptr.vmem [resolvable:$true] %s191_s6 }
  0x10   : > { %p1259_p12 = scmp.ne.s32.totalorder %s1759_s1, %s1258_s9  ;;  %p1265_p5 = scmp.lt.u32.totalorder %s1258_s9, %s1759_s1 }
  0x11   : > { %p1511_p11 = pnand %p1147_p9, %p1764_p1 }
  0x13   : > { %p1260_p13 = pneg %p1511_p11 }
  0x15   : > { %p1261_p0 = pnand %p1260_p13, %p1259_p12 }
  0x17   : > { %p1262_p3 = pneg %p1261_p0 }
  0x19   : > { %p1267_p7 = pnand %p1265_p5, %p1262_p3 }
  0x1b   : > { %1270 = shalt.err (!%p1267_p7)
}
  0x1c   : > { %s1271_s14 = scalar_lea.vmem %s1504_s28, 1536  ;;  %p1279_p2 = scmp.lt.s32.totalorder %s1504_s28, %s1504_s28 }
  0x1d   : > { %p1272_p9 = scmp.ne.s32.totalorder %s1504_s28, %s1271_s14  ;;  %p1280_p12 = scmp.lt.s32.totalorder %s1271_s14, %s1271_s14 }
  0x1f   : > { %p1274_p10 = pnand %p1272_p9, %p1260_p13  ;;  %p1281_p0 = por %p1280_p12, %p1279_p2 }
  0x21   : > { %p1275_p1 = pneg %p1274_p10 }
  0x23   : > { %p1282_p6 = pnand %p1281_p0, %p1275_p1 }
  0x25   : > { %1285 = shalt.err (!%p1282_p6)
}
  0x26   : > { %s1418_s15 = smov 64   ;;  %s1419_s16 = smov 4  }
  0x27   : > { %1150 = dma.hbm_to_vmem [thread:$0]  (!%p1511_p11), %s1759_s1, 1536, %s1504_s28, [#allocation8], %s1418_s15, %s1418_s15, %s1419_s16  }
  0x28   : > { %s1286_s7 = scalar_lea.hbm %s1761_s3, 3072 }
  0x29   : > { %p1287_p2 = scmp.ne.s32.totalorder %s1761_s3, %s1286_s7  ;;  %p1293_p10 = scmp.lt.u32.totalorder %s1286_s7, %s1761_s3 }
  0x2b   : > { %p1289_p1 = pnand %p1287_p2, %p1260_p13 }
  0x2d   : > { %p1290_p6 = pneg %p1289_p1 }
  0x2f   : > { %p1295_p3 = pnand %p1293_p10, %p1290_p6 }
  0x31   : > { %1298 = shalt.err (!%p1295_p3)
}
  0x32   : > { %s1299_s28 = scalar_lea.vmem %s1515_s6, 3072  ;;  %p1307_p12 = scmp.lt.s32.totalorder %s1515_s6, %s1515_s6 }
  0x33   : > { %p1300_p5 = scmp.ne.s32.totalorder %s1515_s6, %s1299_s28  ;;  %p1308_p0 = scmp.lt.s32.totalorder %s1299_s28, %s1299_s28 }
  0x35   : > { %p1302_p7 = pnand %p1300_p5, %p1260_p13  ;;  %p1309_p2 = por %p1308_p0, %p1307_p12 }
  0x37   : > { %p1303_p9 = pneg %p1302_p7 }
  0x39   : > { %p1310_p1 = pnand %p1309_p2, %p1303_p9 }
  0x3b   : > { %1313 = shalt.err (!%p1310_p1)
}
  0x3c   : > { %1153 = dma.hbm_to_vmem [thread:$0]  (!%p1511_p11), %s1761_s3, 3072, %s1515_s6, [#allocation8], %s1418_s15, %s1418_s15, %s1419_s16  }
  0x3d   : > { %s1570_s14 = sadd.s32 1, %s1414_s21   ;;  %s29_s29 = sadd.s32 1, %s1410_s20 }
  0x3e   : > { %s26_s17 = ssub.s32 %s1414_s21, %s1570_s14  ;;  %p36_p13 = scmp.ne.s32.totalorder %s1410_s20, %s1406_s19 }
  0x3f   : > { %p27_p6 = scmp.eq.s32.totalorder %s26_s17, 0  ;;  %p37_p10 = scmp.eq.s32.totalorder %s1414_s21, 0 }
  0x40   : > { %p1771_p3 = scmp.eq.s32.totalorder %s1481_s22, 1  ;;  %p1164_p7 = scmp.lt.s32.totalorder %s1414_s21, 2 }
  0x41   : > { %s1586_s27 = scalar_select %p27_p6, %s1410_s20, %s29_s29  }
  0x42   : > { %p1580_p5 = por %p1771_p3, %p36_p13  ;;  %p38_p9 = por %p37_p10, %p36_p13 }
  0x43   : > { %s208_s30 = sand.u32 1, %s1410_s20   ;;  %s1059_s6 = sshll.u32 %s1414_s21, 9 }
  0x44   : > { %s1772_s23 = scalar_select %p1580_p5, 1, 0 }
  0x45   : > { %s997_s7 = sshll.u32 %s208_s30, 5  ;;  %s1593_s8 = scalar_lea.hbm %s1758_s0, %s1059_s6 }
  0x46   : > { %s212_s9 = scalar_lea.vmem [#allocation4], %s997_s7  ;;  %p1597_p11 = pnand %p1164_p7, %p38_p9 }
  0x47   : > { %s220_s10 = sshll.u32 %s212_s9, 4  ;;  %s1601_s28 = scalar_lea.sflag [#allocation5], %s208_s30  ;;  %s1595_s10 = int_to_ptr.vmem [resolvable:$true] %s220_s10 }
  0x48   : > { %s1314_s12 = scalar_lea.hbm %s1593_s8, 512  ;;  %p1316_p0 = pneg %p1597_p11 }
  0x49   : > { %p1315_p12 = scmp.ne.s32.totalorder %s1593_s8, %s1314_s12  ;;  %s1319_s17 = scalar_lea.hbm %s1758_s0, 1024 }
  0x4a   : > { %p1320_p13 = scmp.lt.u32.totalorder %s1593_s8, %s1758_s0  ;;  %p1321_p6 = scmp.lt.u32.totalorder %s1319_s17, %s1314_s12 }
  0x4b   : > { %p1317_p2 = pnand %p1316_p0, %p1315_p12  ;;  %p1323_p3 = scmp.lt.u32.totalorder %s1314_s12, %s1593_s8 }
  0x4c   : > { %p1322_p10 = por %p1321_p6, %p1320_p13 }
  0x4d   : > { %p1318_p1 = pneg %p1317_p2 }
  0x4e   : > { %p1324_p7 = por %p1323_p3, %p1322_p10 }
  0x50   : > { %p1325_p9 = pnand %p1324_p7, %p1318_p1 }
  0x52   : > { %1328 = shalt.err (!%p1325_p9)
}
  0x53   : > { %s1329_s30 = scalar_lea.vmem %s1595_s10, 512  ;;  %s1420_s15 = smov [#allocation4]  }
  0x54   : > { %p1330_p12 = scmp.ne.s32.totalorder %s1595_s10, %s1329_s30  ;;  %s1334_s16 = sshll.u32 %s1420_s15, 4  ;;  %s1335_s16 = int_to_ptr.vmem [resolvable:$false] %s1334_s16 }
  0x55   : > { %s1336_s9 = scalar_lea.vmem %s1335_s16, 1024  ;;  %p1337_p4 = scmp.lt.s32.totalorder %s1595_s10, %s1335_s16 }
  0x56   : > { %p1332_p2 = pnand %p1330_p12, %p1316_p0  ;;  %p1338_p13 = scmp.lt.s32.totalorder %s1336_s9, %s1329_s30 }
  0x58   : > { %p1333_p5 = pneg %p1332_p2  ;;  %p1339_p6 = por %p1338_p13, %p1337_p4 }
  0x5a   : > { %p1340_p10 = pnand %p1339_p6, %p1333_p5 }
  0x5c   : > { %1343 = shalt.err (!%p1340_p10)
}
  0x5d   : > { %s1421_s12 = smov 128   ;;  %s1422_s13 = smov 8  }
  0x5e   : > { %1157 = dma.hbm_to_vmem [thread:$0]  (!%p1597_p11), %s1593_s8, 512, %s1595_s10, %s1601_s28, %s1421_s12, %s1421_s12, %s1422_s13  }
  0x5f   : > { %232 = sbr.rel (%p1500_p8) target bundleno = 751 (0x2ef), region = 40  ;;  %s1632_s29 = sand.u32 (!%p1500_p8), 1, %s1406_s19  }
  0x60   : > { %s1002_s17 = sshll.u32 (!%p1500_p8), %s1632_s29, 5  ;;  %s235_s7 = scalar_lea.sflag (!%p1500_p8), [#allocation5], %s1632_s29 }
  0x61   : > { %s238_s6 = scalar_lea.vmem (!%p1500_p8), [#allocation4], %s1002_s17  ;;  %p1774_p4 = scmp.ne.s32.totalorder (!%p1500_p8), %s1767_s24, 0 }
  0x66   : > { %1389 = dma.done.wait (%p1774_p4), %s235_s7, 512  }
  0x67   : > { %1391 = vsyncadd (%p1774_p4), %s235_s7, 4294966784  ;;  %p1775_p5 = scmp.eq.s32.totalorder %s1481_s22, 0 }
  0x69   : > { %1393 = dma.done.wait (%p1775_p5), [#allocation8], 4608   ;;  %p1776_p8 = pmov %p1775_p5 }
  0x6a   : > { %vm276_vm0 = vcmask 516096   ;;  %v1423_v0 = vmov 0.0   ;;  %v1424_v1 = vmov 0   ;;  %vm283_vm1 = vcmask 523264   ;;  %v281_v2 = vld [vmem:[%s238_s6] sm:$0xff]  ;;  %v282_v3 = vld [vmem:[%s238_s6 + $0x8] sm:$0xff] }
  0x6b   : > { %1395 = vsyncadd (%p1776_p8), [#allocation8], 4294962688  ;;  %278 = vst.msk [vmem:[#allocation2 + $0x11] sm:$0x1] %vm276_vm0, %v1423_v0  ;;  %453 = vmatprep.subr.bf16.mxu0 %v1424_v1  ;;  %v1006_v4 = vld [vmem:[%s238_s6 + $0x10] sm:$0xff]  ;;  %v1007_v5 = vld [vmem:[%s238_s6 + $0x18] sm:$0xff] }
  0x6c   : > { %286 = vst.msk [vmem:[#allocation2 + $0x12] sm:$0x1] %vm276_vm0, %v1423_v0  ;;  %277 = vst.msk [vmem:[#allocation2] sm:$0x1] %vm276_vm0, %v1423_v0  ;;  %v1222_v6 = vld [vmem:[#allocation7] sm:$0xff]   ;;  %v1223_v7 = vld [vmem:[#allocation7 + $0x8] sm:$0xff]  }
  0x6d   : > { %279 = vst [vmem:[#allocation3] sm:$0x1] %v1423_v0  ;;  %280 = vst [vmem:[#allocation3 + $0x11] sm:$0x1] %v1423_v0  ;;  %454 = vmatpush1.bf16.msra.mxu0 %v1222_v6  ;;  %v1224_v8 = vld [vmem:[#allocation7 + $0x10] sm:$0xff]   ;;  %s1425_s24 = smov 64  }
  0x6e   : > { %287 = vst.msk [vmem:[#allocation2 + $0x23] sm:$0x1] %vm276_vm0, %v1423_v0  ;;  %288 = vst [vmem:[#allocation3 + $0x12] sm:$0x1] %v1423_v0  ;;  %455 = vmatprep.subr.bf16.mxu0 %v1424_v1  ;;  %v1225_v16 = vld [vmem:[#allocation7 + $0x18] sm:$0xff]   ;;  %v1226_v19 = vld [vmem:[#allocation7 + $0x20] sm:$0xff]  }
  0x6f   : > { %289 = vst [vmem:[#allocation3 + $0x23] sm:$0x1] %v1423_v0  ;;  %284 = vst.msk [vmem:[#allocation2 + $0x1] sm:$0xff] %vm283_vm1, %v281_v2  ;;  %v1227_v21 = vld [vmem:[#allocation7 + $0x28] sm:$0xff]   ;;  %v1234_v22 = vld [vmem:[#allocation9 + $0x40] sm:$0xff]   ;;  %vm1426_vm7 = vmmov 0  }
  0x70   : > { %285 = vst.msk [vmem:[#allocation2 + $0x9] sm:$0xff] %vm283_vm1, %v282_v3  ;;  %293 = vst.msk [vmem:[#allocation2 + $0x13] sm:$0xff] %vm283_vm1, %v1006_v4  ;;  %v1235_v23 = vld [vmem:[#allocation9] sm:$0xff]   ;;  %1062 = vmatprep.subr.bf16.mxu1 %v1234_v22  ;;  %v1236_v24 = vld [vmem:[#allocation9 + $0x48] sm:$0xff]   ;;  %s1700_s28 = scalar_lea.vmem [#allocation10], %s1002_s17  ;;  %s1061_s15 = sshll.u32 %s1481_s22, 9 }
  0x71   : > { %294 = vst.msk [vmem:[#allocation2 + $0x1b] sm:$0xff] %vm283_vm1, %v1007_v5  ;;  %456 = vmatpush1.bf16.msra.mxu0 %v1223_v7  ;;  %1063 = vmatpush3.bf16.msra.mxu1 %v1235_v23  ;;  %v1237_v25 = vld [vmem:[#allocation9 + $0x8] sm:$0xff]   ;;  %v1238_v26 = vld [vmem:[#allocation9 + $0x50] sm:$0xff]   ;;  %v1229_v28 = vld [vmem:[#allocation7 + $0x38] sm:$0xff]   ;;  %s900_s30 = sshll.u32 %s1700_s28, 4  ;;  %s1713_s12 = scalar_lea.hbm %s1763_s5, %s1061_s15  ;;  %s1708_s30 = int_to_ptr.vmem [resolvable:$true] %s900_s30 }
  0x72   : > { %457 = vmatprep.subr.bf16.mxu0 %v1424_v1  ;;  %1064 = vmatprep.subr.bf16.mxu1 %v1236_v24  ;;  %v1228_v27 = vld [vmem:[#allocation7 + $0x30] sm:$0xff]   ;;  %v1240_v30 = vld [vmem:[#allocation9 + $0x58] sm:$0xff]   ;;  %v1230_v32 = vld [vmem:[#allocation7 + $0x40] sm:$0xff]   ;;  %s886_s13 = scalar_lea.sflag [#allocation6], %s1632_s29  ;;  %s1344_s22 = scalar_lea.vmem %s1708_s30, 512 }
  0x73   : > { %v1239_v29 = vld [vmem:[#allocation9 + $0x10] sm:$0xff]   ;;  %v1241_v31 = vld [vmem:[#allocation9 + $0x18] sm:$0xff]   ;;  %v1231_v33 = vld [vmem:[#allocation7 + $0x48] sm:$0xff]   ;;  %p1345_p11 = scmp.ne.s32.totalorder %s1708_s30, %s1344_s22  ;;  %p1777_p0 = scmp.ne.s32.totalorder %s1772_s23, 0 }
  0x74   : > { %v1232_v34 = vld [vmem:[#allocation7 + $0x50] sm:$0xff]   ;;  %v1233_v35 = vld [vmem:[#allocation7 + $0x58] sm:$0xff]   ;;  %v1242_v61 = vld [vmem:[#allocation9 + $0x60] sm:$0xff]   ;;  %s1427_s17 = smov [#allocation10]  }
  0x75   : > { %458 = vmatpush1.bf16.msra.mxu0 %v1224_v8  ;;  %1065 = vmatpush3.bf16.msra.mxu1 %v1237_v25  ;;  %v1243_v62 = vld [vmem:[#allocation9 + $0x20] sm:$0xff]   ;;  %v1244_v63 = vld [vmem:[#allocation9 + $0x68] sm:$0xff]   ;;  %v1246_v2 = vld [vmem:[#allocation9 + $0x70] sm:$0xff]   ;;  %p1346_p1 = pnand %p1345_p11, %p1777_p0  ;;  %s1348_s7 = sshll.u32 %s1427_s17, 4  ;;  %s1349_s7 = int_to_ptr.vmem [resolvable:$false] %s1348_s7 }
  0x76   : > { %v300_v9 = vld [vmem:[#allocation2 + $0x1] sm:$0xff]  ;;  %459 = vmatprep.subr.bf16.mxu0 %v1424_v1  ;;  %1066 = vmatprep.subr.bf16.mxu1 %v1238_v26  ;;  %v1008_v6 = vld [vmem:[%s1760_s2] ss:$0 sm:$0xff]  ;;  %s1350_s6 = scalar_lea.vmem %s1349_s7, 1024  ;;  %p1351_p7 = scmp.lt.s32.totalorder %s1708_s30, %s1349_s7 }
  0x77   : > { %v301_v10 = vld [vmem:[#allocation2 + $0x9] sm:$0xff]  ;;  %v302_v11 = vld [vmem:[#allocation2 + $0x11] sm:$0xff]  ;;  %v295_v36 = vld [vmem:[#allocation2] sm:$0xff]  ;;  %p1347_p3 = pneg %p1346_p1  ;;  %p1352_p9 = scmp.lt.s32.totalorder %s1350_s6, %s1344_s22 }
  0x78   : > { %v1212_v12 = vpack.i.bf16 %v301_v10, %v300_v9  ;;  %v303_v13 = vld [vmem:[#allocation2 + $0x19] sm:$0xff]  ;;  %v304_v14 = vld [vmem:[#allocation2 + $0x21] sm:$0x3]  ;;  %v306_v18 = vld [vmem:[#allocation2 + $0xa] sm:$0xff] }
  0x79   : > { %323 = vrot.lane.b32.xlu1 %v304_v14, %s1425_s24  ;;  %v1217_v15 = vpack.i.bf16 %v303_v13, %v302_v11  ;;  %v305_v17 = vld [vmem:[#allocation2 + $0x2] sm:$0xff]  ;;  %460 = vmatpush1.bf16.msra.mxu0 %v1225_v16  ;;  %v307_v39 = vld [vmem:[#allocation2 + $0x12] sm:$0xff]  ;;  %v308_v40 = vld [vmem:[#allocation2 + $0x1a] sm:$0xff]  ;;  %p1353_p12 = por %p1352_p9, %p1351_p7 }
  0x7a   : > { %1213 = vrot.lane.b32.xlu0 %v1212_v12, %s1425_s24  ;;  %v336_v20 = vpack.c.bf16 %v306_v18, %v305_v17  ;;  %461 = vmatprep.subr.bf16.mxu0 %v1424_v1  ;;  %v296_v38 = vld [vmem:[#allocation2 + $0x8] sm:$0xff]  ;;  %v338_v45 = vpack.c.bf16 %v308_v40, %v307_v39  ;;  %v297_v48 = vld [vmem:[#allocation2 + $0x10] sm:$0xff]  ;;  %v298_v49 = vld [vmem:[#allocation2 + $0x18] sm:$0xff] }
  0x7b   : > { %1067 = vmatpush3.bf16.msra.mxu1 %v1239_v29  ;;  %v309_v54 = vld [vmem:[#allocation2 + $0x22] sm:$0x3]  ;;  %v299_v58 = vld [vmem:[#allocation2 + $0x20] sm:$0x3]  ;;  %v1248_v4 = vld [vmem:[#allocation9 + $0x78] sm:$0xff]   ;;  %p1354_p2 = pnand %p1353_p12, %p1347_p3 }
  0x7c   : > { %1021 = vmatprep.mubr.msk.bf16.mxu0 %vm283_vm1, %v336_v20  ;;  %1068 = vmatprep.subr.bf16.mxu1 %v1240_v30  ;;  %v340_v56 = vpack.c.bf16 %v309_v54, %v309_v54  ;;  %v1247_v3 = vld [vmem:[#allocation9 + $0x30] sm:$0xff]   ;;  %v1249_v5 = vld [vmem:[#allocation9 + $0x38] sm:$0xff]   ;;  %v1250_v30 = vld [vmem:[#allocation9 + $0x80] sm:$0xff]  }
  0x7d   : > { %462 = vmatpush1.bf16.msra.mxu0 %v1226_v19  ;;  %v1257_v54 = vld [vmem:[#allocation9 + $0xb8] sm:$0xff]  }
  0x7e   : > { %1218 = vrot.lane.b32.xlu0 %v1217_v15, %s1425_s24  ;;  %463 = vmatprep.subr.bf16.mxu0 %v1424_v1 }
  0x7f   : > { %1069 = vmatpush3.bf16.msra.mxu1 %v1241_v31 }
  0x80   : > { %1070 = vmatprep.subr.bf16.mxu1 %v1242_v61 }
  0x81   : > { %464 = vmatpush1.bf16.msra.mxu0 %v1227_v21 }
  0x82   : > { %465 = vmatprep.subr.bf16.mxu0 %v1424_v1 }
  0x83   : > { %1071 = vmatpush3.bf16.msra.mxu1 %v1243_v62 }
  0x84   : > { %1072 = vmatprep.subr.bf16.mxu1 %v1244_v63 }
  0x85   : > { %466 = vmatpush1.bf16.msra.mxu0 %v1228_v27 }
  0x86   : > { %467 = vmatprep.subr.bf16.mxu0 %v1424_v1 }
  0x89   : > { %468 = vmatpush1.bf16.msra.mxu0 %v1229_v28 }
  0x8a   : > { %469 = vmatprep.subr.bf16.mxu0 %v1424_v1 }
  0x8d   : > { %470 = vmatpush1.bf16.msra.mxu0 %v1230_v32 }
  0x8e   : > { %471 = vmatprep.subr.bf16.mxu0 %v1424_v1 }
  0x91   : > { %472 = vmatpush1.bf16.msra.mxu0 %v1231_v33 }
  0x92   : > { %473 = vmatprep.subr.bf16.mxu0 %v1424_v1 }
  0x95   : > { %474 = vmatpush1.bf16.msra.mxu0 %v1232_v34 }
  0x96   : > { %475 = vmatprep.subr.bf16.mxu0 %v1424_v1  ;;  %v1245_v1 = vld [vmem:[#allocation9 + $0x28] sm:$0xff]  }
  0x97   : > { %1073 = vmatpush3.bf16.msra.mxu1 %v1245_v1 }
  0x98   : > { %1074 = vmatprep.subr.bf16.mxu1 %v1246_v2 }
  0x99   : > { %476 = vmatpush1.bf16.msra.mxu0 %v1233_v35 }
  0x9b   : > { %1075 = vmatpush3.bf16.msra.mxu1 %v1247_v3 }
  0x9c   : > { %1076 = vmatprep.subr.bf16.mxu1 %v1248_v4 }
  0x9f   : > { %1077 = vmatpush3.bf16.msra.mxu1 %v1249_v5 }
  0xa0   : > { %1107 = vmatprep.subr.bf16.mxu1 %v1423_v0 }
  0xeb   : > { %v324_v57 = vpop.permute.xlu1 %323 }
  0xec   : > { %v1214_v37 = vpop.permute.xlu0 %1213  ;;  %v334_v59 = vsel %vm283_vm1, %v299_v58, %v324_v57 }
  0xed   : > { %v1216_v41 = vunpack.i.h.bf16 %v1214_v37  ;;  %v1215_v42 = vunpack.i.l.bf16 %v1214_v37  ;;  %v339_v60 = vpack.c.bf16 %v334_v59, %v334_v59  ;;  %v1251_v37 = vld [vmem:[#allocation9 + $0x88] sm:$0xff]  }
  0xef   : > { %v330_v43 = vsel %vm283_vm1, %v295_v36, %v1215_v42  ;;  %v331_v44 = vsel %vm283_vm1, %v296_v38, %v1216_v41 }
  0xf0   : > { %v335_v46 = vpack.c.bf16 %v331_v44, %v330_v43  ;;  %v1219_v47 = vpop.permute.xlu0 %1218  ;;  %v1252_v44 = vld [vmem:[#allocation9 + $0x90] sm:$0xff]  }
  0xf1   : > { %v1221_v50 = vunpack.i.h.bf16 %v1219_v47  ;;  %v1220_v51 = vunpack.i.l.bf16 %v1219_v47 }
  0xf2   : > { %486 = vmatmul.mubr.bf16.vlgmr.msra.gmra.mrb[0].mxu0 %v335_v46  ;;  %v1253_v46 = vld [vmem:[#allocation9 + $0x98] sm:$0xff]  }
  0xf3   : > { %1022 = vmatprep.mubr.msk.bf16.mxu0 %vm283_vm1, %v338_v45  ;;  %v332_v52 = vsel %vm283_vm1, %v297_v48, %v1220_v51  ;;  %v333_v53 = vsel %vm283_vm1, %v298_v49, %v1221_v50  ;;  %v1254_v50 = vld [vmem:[#allocation9 + $0xa0] sm:$0xff]  }
  0xf4   : > { %v337_v55 = vpack.c.bf16 %v333_v53, %v332_v52  ;;  %v1255_v52 = vld [vmem:[#allocation9 + $0xa8] sm:$0xff]   ;;  %v1256_v53 = vld [vmem:[#allocation9 + $0xb0] sm:$0xff]  }
  0xfa   : > { %494 = vmatmul.mubr.bf16.gmra.mrb[4].mxu0 %v337_v55 }
  0xfb   : > { %1023 = vmatprep.mubr.msk.bf16.mxu0 %vm283_vm1, %v340_v56 }
 0x102   : > { %502 = vmatmul.mubr.bf16.gmra.mrb[8].mxu0 %v339_v60 }
 0x1c5   : > { %v487_v7 = vpop.f32.mrb[0].mxu0 }
 0x1c6   : > { %v488_v8 = vadd.f32 %v1008_v6, %v487_v7  ;;  %v489_v9 = vpop.f32.mrb[1].mxu0 }
 0x1c7   : > { %v490_v10 = vpop.f32.mrb[2].mxu0 }
 0x1c8   : > { %vm509_vm2 = vcmp.ge.f32.partialorder %v488_v8, 0.0  ;;  %v514_v11 = vmul.f32 0.01, %v488_v8  ;;  %v491_v12 = vadd.f32 %v1008_v6, %v490_v10  ;;  %v492_v13 = vpop.f32.mrb[3].mxu0 }
 0x1ca   : > { %v519_v14 = vsel %vm509_vm2, %v488_v8, %v514_v11  ;;  %vm510_vm3 = vcmp.ge.f32.partialorder %v491_v12, 0.0  ;;  %v515_v15 = vmul.f32 0.01, %v491_v12 }
 0x1cb   : > { %524 = vst [vmem:[#allocation3 + $0x1] sm:$0xff] %v519_v14 }
 0x1cc   : > { %v520_v16 = vsel %vm510_vm3, %v491_v12, %v515_v15 }
 0x1cd   : > { %525 = vst [vmem:[#allocation3 + $0x9] sm:$0xff] %v520_v16  ;;  %v495_v17 = vpop.f32.mrb[4].mxu0  ;;  %v545_v18 = vpack.c.bf16 %v520_v16, %v519_v14  ;;  %v1024_v16 = vld [vmem:[%s1762_s4] ss:$0 sm:$0xff] }
 0x1ce   : > { %v496_v19 = vadd.f32 %v1008_v6, %v495_v17  ;;  %v497_v20 = vpop.f32.mrb[5].mxu0 }
 0x1cf   : > { %v498_v21 = vpop.f32.mrb[6].mxu0  ;;  %784 = vmatprep.mubr.bf16.mxu1 %v545_v18 }
 0x1d0   : > { %vm511_vm4 = vcmp.ge.f32.partialorder %v496_v19, 0.0  ;;  %v516_v22 = vmul.f32 0.01, %v496_v19  ;;  %v499_v23 = vadd.f32 %v1008_v6, %v498_v21  ;;  %v500_v24 = vpop.f32.mrb[7].mxu0 }
 0x1d2   : > { %v521_v25 = vsel %vm511_vm4, %v496_v19, %v516_v22  ;;  %vm512_vm5 = vcmp.ge.f32.partialorder %v499_v23, 0.0  ;;  %v517_v26 = vmul.f32 0.01, %v499_v23  ;;  %v529_v28 = vld [vmem:[#allocation3] sm:$0xff] }
 0x1d3   : > { %526 = vst [vmem:[#allocation3 + $0x11] sm:$0xfc] %v521_v25 }
 0x1d4   : > { %v522_v27 = vsel %vm512_vm5, %v499_v23, %v517_v26  ;;  %v530_v29 = vld [vmem:[#allocation3 + $0x8] sm:$0xff] }
 0x1d5   : > { %527 = vst [vmem:[#allocation3 + $0x19] sm:$0xff] %v522_v27  ;;  %v503_v31 = vpop.f32.mrb[8].mxu0  ;;  %v544_v32 = vpack.c.bf16 %v530_v29, %v529_v28  ;;  %v539_v55 = vld [vmem:[#allocation3 + $0x2] sm:$0xff]  ;;  %v540_v56 = vld [vmem:[#allocation3 + $0xa] sm:$0xff] }
 0x1d6   : > { %v504_v33 = vadd.f32 %v1008_v6, %v503_v31  ;;  %v505_v34 = vpop.f32.mrb[9].mxu0  ;;  %v546_v57 = vpack.c.bf16 %v540_v56, %v539_v55 }
 0x1d7   : > { %785 = vmatmul.mubr.bf16.vlgmr.msra.gmra.mrb[0].mxu1 %v544_v32  ;;  %v506_v35 = vpop.f32.mrb[10].mxu0 }
 0x1d8   : > { %vm513_vm6 = vcmp.ge.f32.partialorder %v504_v33, 0.0  ;;  %v518_v36 = vmul.f32 0.01, %v504_v33  ;;  %1108 = vmatpush3.bf16.msra.mxu1 %v1250_v30  ;;  %v507_v38 = vpop.f32.mrb[11].mxu0 }
 0x1d9   : > { %1109 = vmatprep.subr.bf16.mxu1 %v1423_v0 }
 0x1da   : > { %v523_v39 = vsel %vm513_vm6, %v504_v33, %v518_v36  ;;  %v536_v40 = vld [vmem:[#allocation3 + $0x11] sm:$0xff] }
 0x1db   : > { %528 = vst [vmem:[#allocation3 + $0x21] sm:$0x3] %v523_v39  ;;  %v548_v41 = vpack.c.bf16 %v522_v27, %v536_v40  ;;  %v531_v42 = vld [vmem:[#allocation3 + $0x10] sm:$0xff] }
 0x1dc   : > { %1110 = vmatpush3.bf16.msra.mxu1 %v1251_v37  ;;  %v532_v43 = vld [vmem:[#allocation3 + $0x18] sm:$0xff] }
 0x1dd   : > { %792 = vmatprep.mubr.bf16.mxu1 %v548_v41  ;;  %1111 = vmatprep.subr.bf16.mxu1 %v1423_v0  ;;  %v547_v45 = vpack.c.bf16 %v532_v43, %v531_v42  ;;  %v541_v59 = vld [vmem:[#allocation3 + $0x12] sm:$0xff] }
 0x1df   : > { %793 = vmatmul.mubr.bf16.gmra.mrb[4].mxu1 %v547_v45 }
 0x1e0   : > { %1112 = vmatpush3.bf16.msra.mxu1 %v1252_v44 }
 0x1e1   : > { %1113 = vmatprep.subr.bf16.mxu1 %v1423_v0 }
 0x1e2   : > { %v538_v47 = vld [vmem:[#allocation3 + $0x21] sm:$0x3] }
 0x1e3   : > { %v533_v48 = vld [vmem:[#allocation3 + $0x20] sm:$0x3]  ;;  %v551_v49 = vpack.c.bf16 %v538_v47, %v538_v47  ;;  %v543_v61 = vld [vmem:[#allocation3 + $0x22] sm:$0x3] }
 0x1e4   : > { %1114 = vmatpush3.bf16.msra.mxu1 %v1253_v46  ;;  %v550_v51 = vpack.c.bf16 %v533_v48, %v533_v48  ;;  %v542_v58 = vld [vmem:[#allocation3 + $0x1a] sm:$0xff]  ;;  %v552_v62 = vpack.c.bf16 %v543_v61, %v543_v61 }
 0x1e5   : > { %800 = vmatprep.mubr.bf16.mxu1 %v551_v49  ;;  %1115 = vmatprep.subr.bf16.mxu1 %v1423_v0  ;;  %v549_v60 = vpack.c.bf16 %v542_v58, %v541_v59 }
 0x1e7   : > { %801 = vmatmul.mubr.bf16.gmra.mrb[8].mxu1 %v550_v51 }
 0x1e8   : > { %1116 = vmatpush3.bf16.msra.mxu1 %v1254_v50  ;;  %1123 = vmatprep.mubr.msk.bf16.mxu1 %vm1426_vm7, %v1423_v0 }
 0x1e9   : > { %1117 = vmatprep.subr.bf16.mxu1 %v1423_v0 }
 0x1ec   : > { %1118 = vmatpush3.bf16.msra.mxu1 %v1255_v52 }
 0x1ed   : > { %1119 = vmatprep.subr.bf16.mxu1 %v1423_v0 }
 0x1f0   : > { %1120 = vmatpush3.bf16.msra.mxu1 %v1256_v53 }
 0x1f1   : > { %1121 = vmatprep.subr.bf16.mxu1 %v1423_v0 }
 0x1f4   : > { %1122 = vmatpush3.bf16.msra.mxu1 %v1257_v54 }
 0x1f7   : > { %1124 = vmatmul.mubr.bf16.vlgmr.msra.gmra.mrb[12].mxu1 %v546_v57 }
 0x1f8   : > { %1127 = vmatprep.mubr.msk.bf16.mxu1 %vm1426_vm7, %v1423_v0 }
 0x1ff   : > { %1128 = vmatmul.mubr.bf16.gmra.mrb[16].mxu1 %v549_v60 }
 0x200   : > { %1131 = vmatprep.mubr.msk.bf16.mxu1 %vm1426_vm7, %v1423_v0 }
 0x207   : > { %1132 = vmatmul.mubr.bf16.gmra.mrb[20].mxu1 %v552_v62 }
 0x2aa   : > { %v1078_v63 = vpop.f32.mrb[0].mxu1 }
 0x2ab   : > { %v1079_v1 = vpop.f32.mrb[1].mxu1 }
 0x2ac   : > { %v1080_v2 = vadd.f32 %v1079_v1, %v1078_v63  ;;  %v1081_v3 = vpop.f32.mrb[2].mxu1 }
 0x2ad   : > { %v1082_v4 = vpop.f32.mrb[3].mxu1 }
 0x2ae   : > { %v1083_v5 = vadd.f32 %v1082_v4, %v1081_v3  ;;  %v787_v17 = vadd.f32 %v1080_v2, %v1024_v16 }
 0x2b0   : > { %v790_v21 = vadd.f32 %v1083_v5, %v1024_v16 }
 0x2b2   : > { %v1084_v6 = vpop.f32.mrb[4].mxu1 }
 0x2b3   : > { %v1085_v7 = vpop.f32.mrb[5].mxu1 }
 0x2b4   : > { %v1086_v8 = vadd.f32 %v1085_v7, %v1084_v6  ;;  %v1087_v9 = vpop.f32.mrb[6].mxu1 }
 0x2b5   : > { %v1088_v10 = vpop.f32.mrb[7].mxu1 }
 0x2b6   : > { %v1089_v11 = vadd.f32 %v1088_v10, %v1087_v9  ;;  %v795_v29 = vadd.f32 %v1086_v8, %v1024_v16 }
 0x2b8   : > { %v798_v33 = vadd.f32 %v1089_v11, %v1024_v16 }
 0x2ba   : > { %v1090_v12 = vpop.f32.mrb[8].mxu1 }
 0x2bb   : > { %v1091_v13 = vpop.f32.mrb[9].mxu1 }
 0x2bc   : > { %v1092_v14 = vadd.f32 %v1091_v13, %v1090_v12  ;;  %v1093_v15 = vpop.f32.mrb[10].mxu1 }
 0x2bd   : > { %v1094_v0 = vpop.f32.mrb[11].mxu1 }
 0x2be   : > { %v803_v41 = vadd.f32 %v1092_v14, %v1024_v16 }
 0x2ca   : > { %v842_v18 = vpop.f32.mrb[12].mxu1 }
 0x2cb   : > { %v843_v19 = vadd.f32 %v842_v18, %v787_v17  ;;  %v1125_v20 = vpop.f32.mrb[13].mxu1 }
 0x2cc   : > { %v845_v22 = vpop.f32.mrb[14].mxu1 }
 0x2cd   : > { %vm864_vm8 = vcmp.ge.f32.partialorder %v843_v19, 0.0  ;;  %v869_v23 = vmul.f32 0.01, %v843_v19  ;;  %v846_v24 = vadd.f32 %v845_v22, %v790_v21  ;;  %v1126_v25 = vpop.f32.mrb[15].mxu1 }
 0x2cf   : > { %v874_v26 = vsel %vm864_vm8, %v843_v19, %v869_v23  ;;  %vm865_vm9 = vcmp.ge.f32.partialorder %v846_v24, 0.0  ;;  %v870_v27 = vmul.f32 0.01, %v846_v24 }
 0x2d0   : > { %879 = vst [vmem:[%s1700_s28] sm:$0xff] %v874_v26 }
 0x2d1   : > { %v875_v28 = vsel %vm865_vm9, %v846_v24, %v870_v27 }
 0x2d2   : > { %880 = vst [vmem:[%s1700_s28 + $0x8] sm:$0xff] %v875_v28  ;;  %v850_v30 = vpop.f32.mrb[16].mxu1 }
 0x2d3   : > { %v851_v31 = vadd.f32 %v850_v30, %v795_v29  ;;  %v1129_v32 = vpop.f32.mrb[17].mxu1 }
 0x2d4   : > { %v853_v34 = vpop.f32.mrb[18].mxu1 }
 0x2d5   : > { %vm866_vm10 = vcmp.ge.f32.partialorder %v851_v31, 0.0  ;;  %v871_v35 = vmul.f32 0.01, %v851_v31  ;;  %v854_v36 = vadd.f32 %v853_v34, %v798_v33  ;;  %v1130_v37 = vpop.f32.mrb[19].mxu1 }
 0x2d7   : > { %v876_v38 = vsel %vm866_vm10, %v851_v31, %v871_v35  ;;  %vm867_vm11 = vcmp.ge.f32.partialorder %v854_v36, 0.0  ;;  %v872_v39 = vmul.f32 0.01, %v854_v36 }
 0x2d8   : > { %1049 = vst [vmem:[%s1700_s28 + $0xe] sm:$0xfc] %v876_v38 }
 0x2d9   : > { %v877_v40 = vsel %vm867_vm11, %v854_v36, %v872_v39 }
 0x2da   : > { %1050 = vst [vmem:[%s1700_s28 + $0x16] sm:$0xff] %v877_v40  ;;  %v858_v42 = vpop.f32.mrb[20].mxu1 }
 0x2db   : > { %v859_v43 = vadd.f32 %v858_v42, %v803_v41  ;;  %v1133_v44 = vpop.f32.mrb[21].mxu1 }
 0x2dc   : > { %v861_v45 = vpop.f32.mrb[22].mxu1 }
 0x2dd   : > { %vm868_vm12 = vcmp.ge.f32.partialorder %v859_v43, 0.0  ;;  %v873_v46 = vmul.f32 0.01, %v859_v43  ;;  %v1134_v47 = vpop.f32.mrb[23].mxu1 }
 0x2df   : > { %v878_v48 = vsel %vm868_vm12, %v859_v43, %v873_v46 }
 0x2e0   : > { %1051 = vst [vmem:[%s1700_s28 + $0x1e] sm:$0x3] %v878_v48 }
 0x2e1   : > { %1357 = shalt.err (!%p1354_p2)
}
 0x2e2   : > { %s1358_s24 = scalar_lea.hbm %s1713_s12, 512  ;;  %s1362_s10 = scalar_lea.hbm %s1763_s5, 1024 }
 0x2e3   : > { %p1359_p13 = scmp.ne.s32.totalorder %s1713_s12, %s1358_s24  ;;  %p1363_p4 = scmp.lt.u32.totalorder %s1713_s12, %s1763_s5 }
 0x2e4   : > { %p1364_p5 = scmp.lt.u32.totalorder %s1362_s10, %s1358_s24  ;;  %p1366_p11 = scmp.lt.u32.totalorder %s1358_s24, %s1713_s12 }
 0x2e5   : > { %p1360_p6 = pnand %p1359_p13, %p1777_p0 }
 0x2e6   : > { %p1365_p8 = por %p1364_p5, %p1363_p4 }
 0x2e7   : > { %p1361_p10 = pneg %p1360_p6 }
 0x2e8   : > { %p1367_p1 = por %p1366_p11, %p1365_p8 }
 0x2ea   : > { %p1368_p3 = pnand %p1367_p1, %p1361_p10 }
 0x2ec   : > { %1371 = shalt.err (!%p1368_p3)
}
 0x2ed   : > { %s1428_s15 = smov 128   ;;  %s1429_s16 = smov 8  }
 0x2ee   : > { %1145 = dma.vmem_to_hbm [thread:$0]  (%p1777_p0), %s1708_s30, 512, %s1713_s12, %s886_s13, %s1428_s15, %s1428_s15, %s1429_s16  }
 0x2ef PF: > { %s915_s9 = sand.u32 1, %s1402_s18   ;;  %p1778_p7 = scmp.ne.s32.totalorder %s1768_s25, 0 }
 0x2f0   : > { %p1779_p9 = scmp.ge.s32.totalorder %s1414_s21, 2  ;;  %s916_s22 = scalar_lea.sflag [#allocation6], %s915_s9 }
 0x2f2   : > { %p1159_p12 = pnand %p1779_p9, %p1778_p7 }
 0x2f4   : > { %1397 = dma.done.wait (!%p1159_p12), %s916_s22, 512  }
 0x2f5   : > { %1399 = vsyncadd (!%p1159_p12), %s916_s22, 4294966784  ;;  %p19_p2 = scmp.ge.s32.totalorder %s1570_s14, 4   ;;  %s1780_s18 = smov %s1406_s19 }
 0x2f6   : > { %s1781_s19 = smov %s1410_s20  ;;  %s1782_s20 = smov %s1586_s27 }
 0x2f7   : > { %s1783_s21 = smov %s1570_s14  ;;  %21 = sbr.rel (!%p19_p2) target bundleno = 6 (0x6), region = 95 }
 0x2fe   :  { %921 = vsyncpa [#allocation5], 1 }
 0x2ff   :  { %923 = vsyncpa [#allocation5 + $0x1], 1 }
 0x300   :  { %924 = vsyncpa [#allocation8], 1 }
 0x301   :  { %925 = vsyncpa [#allocation6], 1 }
 0x302   :  { %927 = vsyncpa [#allocation6 + $0x1], 1 }

</bundles_post_ra>
